<compile_context>
chip_gen: v5e
topology: v5e:2x2
jax: 0.10.0
libtpu: 0.0.40
codegen_flags: <defaults>
</compile_context>

<pallas_src>
import numpy as np
import jax
import jax.numpy as jnp
from jax import lax
from jax.experimental import pallas as pl
from jax.experimental.pallas import tpu as pltpu


# --------------------------------------------------------------------------
# VMEM budget / tiling helpers.
# --------------------------------------------------------------------------
def _vmem_limit_bytes():
    cap = 64 * 1024 * 1024                      # conservative default (v7x physical)
    try:
        info = pltpu.get_tpu_info()
        cap = int(getattr(info, "vmem_capacity_bytes", cap))
    except Exception:
        pass
    # leave headroom for double-buffering / compiler scratch
    return int(min(cap * 3 // 4, 96 * 1024 * 1024))


def _pick_tile(total, target):
    """Largest divisor of `total` <= target that is a multiple of 8 (else total)."""
    if total <= target:
        return total
    for d in range(target, 0, -1):
        if total % d == 0 and d % 8 == 0:
            return d
    return total


def _pick_tile_rows(Hs, Ws, W, Ci, Co, isz, budget):
    """Largest even divisor of Hs whose per-tile VMEM footprint fits `budget`."""
    per_row = (2 * (Ws * Ci * isz               # skip rows (double buffered)
                    + (W * Co * isz) // 2       # x rows (TH/2 per tile)
                    + Ws * Co * 4)              # f32 output rows
               + 9 * Ws * Ci * isz              # im2col patches
               + 4 * Ws * Co * 4)               # acc/enc/inter/up f32 temporaries
    fixed = 2 * (9 * Ci * Co * isz) + (2 << 20)
    cap_rows = max(2, (budget - fixed) // max(per_row, 1))
    target = int(min(Hs, 256, cap_rows))
    for d in range(target, 1, -1):
        if Hs % d == 0 and d % 2 == 0:
            return d
    return 2


# --------------------------------------------------------------------------
# Kernel A: decoder gate = Sigmoid(BN(Conv1x1(GlobalAvgPool(x)))).
# grid = (B, n_spatial_tiles); spatial axis is a reduction ("arbitrary").
# The GAP partial sum is a ones-GEMV on the MXU; w2 carries the 1/(H*W) factor.
# --------------------------------------------------------------------------
def _gate_kernel(x_ref, w2_ref, b2_ref, g_ref, acc_ref):
    # x_ref: (1, T, Co) mxu dtype;  acc_ref: (1, Co) f32 running channel sum.
    @pl.when(pl.program_id(1) == 0)
    def _():
        acc_ref[...] = jnp.zeros_like(acc_ref)

    ones = jnp.ones((1, x_ref.shape[1]), x_ref.dtype)
    acc_ref[...] += jnp.dot(ones, x_ref[0], preferred_element_type=jnp.float32)

    @pl.when(pl.program_id(1) == pl.num_programs(1) - 1)
    def _():
        g = jnp.dot(acc_ref[...], w2_ref[...],
                    preferred_element_type=jnp.float32) + b2_ref[...]
        g_ref[0] = jax.nn.sigmoid(g)


# --------------------------------------------------------------------------
# Kernel B: fused encoder 3x3 conv (one im2col matmul, BN folded, ReLU),
# gate * enc, and the full separable bilinear x2 upsample of x as in-kernel
# 2-tap column + row lerps.  Everything stays in (rows, Ws, Co) layout.
# --------------------------------------------------------------------------
def _make_fuse_kernel(H, W):
    Hs, Ws = 2 * H, 2 * W
    inv_r = 1.0 / float(Hs - 1)
    inv_c = 1.0 / float(Ws - 1)

    def kernel(skip_ref, shalo_ref, x_ref, xhalo_ref, w3_ref, b3_ref, g_ref,
               o_ref):
        # skip_ref:  (1, TH, Ws, Ci)   mxu dtype, this tile's skip rows
        # shalo_ref: (1, 2, Ws, Ci)    mxu dtype, row above / row below the tile
        # x_ref:     (1, TH//2, W, Co) mxu dtype, upsample source rows
        # xhalo_ref: (1, 2, W, Co)     mxu dtype, x row above / below the tile
        # w3_ref:    (9*Ci, Co)        mxu dtype, im2col conv weight (dy,dx,ci)
        # b3_ref:    (1, Co)   f32     folded BN shift
        # g_ref:     (1, 1, Co) f32    per-batch sigmoid gate
        # o_ref:     (1, TH, Ws, Co) f32
        th, ws, co = o_ref.shape[1], o_ref.shape[2], o_ref.shape[3]
        ci = skip_ref.shape[3]
        hh = th // 2

        # ---- encoder branch: 3x3 conv (BN folded) as ONE im2col matmul -----
        halo = shalo_ref[0]                                       # (2, Ws, Ci)
        rows = jnp.concatenate([halo[0:1], skip_ref[0], halo[1:2]], axis=0)
        zcol = jnp.zeros((th + 2, 1, ci), rows.dtype)
        win = jnp.concatenate([zcol, rows, zcol], axis=1)         # (TH+2, Ws+2, Ci)
        patches = jnp.concatenate(
            [win[dy:dy + th, dx:dx + ws, :] for dy in range(3) for dx in range(3)],
            axis=-1)                                              # (TH, Ws, 9*Ci)
        acc = jnp.dot(patches.reshape(th * ws, 9 * ci), w3_ref[...],
                      preferred_element_type=jnp.float32)         # (TH*Ws, Co)
        enc = jnp.maximum(acc + b3_ref[...], 0.0).reshape(th, ws, co)
        inter = g_ref[0] * enc                                    # gate * enc, f32

        # ---- bilinear x2 upsample (align_corners=True), 2-tap lerps --------
        xh = xhalo_ref[0]                                         # (2, W, Co)
        xa = jnp.concatenate([xh[0:1], x_ref[0], xh[1:2]], axis=0)  # (hh+2, W, Co)

        # column lerp (W -> Ws).  Edge taps that fall outside carry weight 0,
        # so the clamped neighbor columns never contribute.
        colf = lax.broadcasted_iota(jnp.int32, (hh + 2, W, 1), 1).astype(jnp.float32)
        ap = colf * inv_c                                         # weight on col s-1
        bn = (float(W - 1) - colf) * inv_c                        # weight on col s+1
        x_prev = jnp.concatenate([xa[:, :1], xa[:, :-1]], axis=1)
        x_next = jnp.concatenate([xa[:, 1:], xa[:, -1:]], axis=1)
        even_c = ap * x_prev + (1.0 - ap) * xa                    # output cols 0,2,...
        odd_c = (1.0 - bn) * xa + bn * x_next                     # output cols 1,3,...
        xc = jnp.concatenate([even_c, odd_c], axis=-1).reshape(hh + 2, ws, co)

        # row lerp ((hh+2)-row window -> TH output rows of this tile).  The
        # zeroed halo rows are only ever multiplied by an exactly-zero weight.
        k0 = (pl.program_id(1) * hh).astype(jnp.float32)
        rowf = lax.broadcasted_iota(jnp.int32, (hh, ws, 1), 0).astype(jnp.float32) + k0
        ae = rowf * inv_r                                         # weight on x row k-1
        bo = (float(H - 1) - rowf) * inv_r                        # weight on x row k+1
        prev_r, curr_r, next_r = xc[0:hh], xc[1:hh + 1], xc[2:hh + 2]
        even_r = ae * prev_r + (1.0 - ae) * curr_r                # output rows 0,2,...
        odd_r = (1.0 - bo) * curr_r + bo * next_r                 # output rows 1,3,...
        up = jnp.stack([even_r, odd_r], axis=1).reshape(th, ws, co)

        o_ref[0] = (inter + up).astype(o_ref.dtype)

    return kernel


# --------------------------------------------------------------------------
# Host-side wrapper.
# --------------------------------------------------------------------------
def gau_forward(x_nchw, skip_nchw, p, *, mxu_dtype=jnp.bfloat16, tile_rows=None):
    x = jnp.transpose(x_nchw, (0, 2, 3, 1))                      # (B, H, W, Co)
    skip = jnp.transpose(skip_nchw, (0, 2, 3, 1))                # (B, Hs, Ws, Ci)
    B, H, W, Co = x.shape
    _, Hs, Ws, Ci = skip.shape
    assert Hs == 2 * H and Ws == 2 * W, "skip must be at 2x the spatial size of x"
    HW = H * W
    isz = jnp.dtype(mxu_dtype).itemsize
    vmem_limit = _vmem_limit_bytes()

    # single narrow copy of each input, shared by all kernels
    x_mx = x.astype(mxu_dtype)
    skip_mx = skip.astype(mxu_dtype)

    # ------------- decoder gate: tiled GAP + folded 1x1 + sigmoid -----------
    T = _pick_tile(HW, 2048)
    n_sp = HW // T
    w2_mean = (p["w2"] * (1.0 / HW)).astype(jnp.float32)          # fold the mean
    gate = pl.pallas_call(
        _gate_kernel,
        out_shape=jax.ShapeDtypeStruct((B, 1, Co), jnp.float32),
        grid=(B, n_sp),
        in_specs=[pl.BlockSpec((1, T, Co), lambda b, t: (b, t, 0)),
                  pl.BlockSpec((Co, Co), lambda b, t: (0, 0)),
                  pl.BlockSpec((1, Co), lambda b, t: (0, 0))],
        out_specs=pl.BlockSpec((1, 1, Co), lambda b, t: (b, 0, 0)),
        scratch_shapes=[pltpu.VMEM((1, Co), jnp.float32)],
        compiler_params=pltpu.CompilerParams(
            dimension_semantics=("parallel", "arbitrary"),
            vmem_limit_bytes=vmem_limit),
    )(x_mx.reshape(B, HW, Co), w2_mean, p["b2"].astype(jnp.float32))

    # ------------- output row tiling ----------------------------------------
    if tile_rows is None:
        TH = _pick_tile_rows(Hs, Ws, W, Ci, Co, isz, (vmem_limit * 3) // 5)
    else:
        TH = tile_rows
    assert Hs % TH == 0 and TH % 2 == 0, "tile_rows must be an even divisor of 2*H"
    n_tiles = Hs // TH
    hh = TH // 2
    ti = np.arange(n_tiles)

    # 1-row halos above/below each tile (tiny: 2 rows per tile). Top of the
    # first tile / bottom of the last tile are the conv zero-padding rows; for
    # x they only ever meet an exactly-zero interpolation weight.
    top = skip_mx[:, np.maximum(ti * TH - 1, 0)]
    top = top.at[:, 0].set(0.0)
    bot = skip_mx[:, np.minimum(ti * TH + TH, Hs - 1)]
    bot = bot.at[:, -1].set(0.0)
    skip_halo = jnp.stack([top, bot], axis=2).reshape(B * n_tiles, 2, Ws, Ci)

    xtop = x_mx[:, np.maximum(ti * hh - 1, 0)]
    xtop = xtop.at[:, 0].set(0.0)
    xbot = x_mx[:, np.minimum(ti * hh + hh, H - 1)]
    xbot = xbot.at[:, -1].set(0.0)
    x_halo = jnp.stack([xtop, xbot], axis=2).reshape(B * n_tiles, 2, W, Co)

    w3 = p["w3"].astype(mxu_dtype)                                # (9*Ci, Co)
    b3 = p["b3"].astype(jnp.float32)

    out_nhwc = pl.pallas_call(
        _make_fuse_kernel(H, W),
        out_shape=jax.ShapeDtypeStruct((B, Hs, Ws, Co), jnp.float32),
        grid=(B, n_tiles),
        in_specs=[
            pl.BlockSpec((1, TH, Ws, Ci), lambda b, t: (b, t, 0, 0)),
            pl.BlockSpec((1, 2, Ws, Ci), lambda b, t: (b * n_tiles + t, 0, 0, 0)),
            pl.BlockSpec((1, hh, W, Co), lambda b, t: (b, t, 0, 0)),
            pl.BlockSpec((1, 2, W, Co), lambda b, t: (b * n_tiles + t, 0, 0, 0)),
            pl.BlockSpec((9 * Ci, Co), lambda b, t: (0, 0)),
            pl.BlockSpec((1, Co), lambda b, t: (0, 0)),
            pl.BlockSpec((1, 1, Co), lambda b, t: (b, 0, 0)),
        ],
        out_specs=pl.BlockSpec((1, TH, Ws, Co), lambda b, t: (b, t, 0, 0)),
        compiler_params=pltpu.CompilerParams(
            dimension_semantics=("parallel", "parallel"),
            vmem_limit_bytes=vmem_limit),
    )(skip_mx, skip_halo, x_mx, x_halo, w3, b3, gate)

    return jnp.transpose(out_nhwc, (0, 3, 1, 2))                  # back to NCHW


# --------------------------------------------------------------------------
# Deterministic parameters (conv weights + eval-mode BN folded).
# --------------------------------------------------------------------------
def make_params(key, enc_c, out_c):
    eps = 1e-5
    kd, ke, kbn2, kbn3 = jax.random.split(key, 4)

    def bn_fold(k, c):
        kg, kb, km, kv = jax.random.split(k, 4)
        gamma = 0.5 + jax.random.uniform(kg, (c,), jnp.float32)
        beta = 0.1 * jax.random.normal(kb, (c,), jnp.float32)
        mean = 0.1 * jax.random.normal(km, (c,), jnp.float32)
        var = 0.5 + jax.random.uniform(kv, (c,), jnp.float32)
        scale = gamma / jnp.sqrt(var + eps)
        shift = beta - scale * mean
        return scale, shift

    wd = 0.2 * jax.random.normal(kd, (out_c, out_c), jnp.float32)        # 1x1 gate (OI)
    we = 0.2 * jax.random.normal(ke, (out_c, enc_c, 3, 3), jnp.float32)  # 3x3 enc (OIHW)
    s2, t2 = bn_fold(kbn2, out_c)
    s3, t3 = bn_fold(kbn3, out_c)

    w3_hwio = jnp.transpose(we * s3[:, None, None, None], (2, 3, 1, 0))  # (3,3,Ci,Co)
    return {
        "w2": (wd * s2[:, None]).T,                    # (Co, Co), gate = m @ w2 + b2
        "b2": t2[None, :],
        "w3": w3_hwio.reshape(9 * enc_c, out_c),       # im2col weight (dy,dx,ci)-major
        "b3": t3[None, :],
        "w3_hwio": w3_hwio,
    }


# --------------------------------------------------------------------------
# Pure-JAX reference (independent of the kernel path).
# --------------------------------------------------------------------------
def _bilinear_up2_align_corners(y):  # (B,H,W,C) -> (B,2H,2W,C)
    B, H, W, C = y.shape
    Hs, Ws = 2 * H, 2 * W
    rp = jnp.arange(Hs, dtype=jnp.float32) * (H - 1) / (Hs - 1)
    cp = jnp.arange(Ws, dtype=jnp.float32) * (W - 1) / (Ws - 1)
    r0 = jnp.floor(rp).astype(jnp.int32); r1 = jnp.minimum(r0 + 1, H - 1)
    c0 = jnp.floor(cp).astype(jnp.int32); c1 = jnp.minimum(c0 + 1, W - 1)
    rw = (rp - r0.astype(jnp.float32))[None, :, None, None]
    cw = (cp - c0.astype(jnp.float32))[None, None, :, None]
    yr0, yr1 = y[:, r0], y[:, r1]
    top = yr0[:, :, c0] * (1 - cw) + yr0[:, :, c1] * cw
    bot = yr1[:, :, c0] * (1 - cw) + yr1[:, :, c1] * cw
    return top * (1 - rw) + bot * rw


def reference(x_nchw, skip_nchw, p):
    x = jnp.transpose(x_nchw, (0, 2, 3, 1)).astype(jnp.float32)
    skip = jnp.transpose(skip_nchw, (0, 2, 3, 1)).astype(jnp.float32)
    g = jax.nn.sigmoid(jnp.mean(x, axis=(1, 2)) @ p["w2"] + p["b2"])     # (B, Co)
    enc = lax.conv_general_dilated(skip, p["w3_hwio"], (1, 1), "SAME",
                                   dimension_numbers=("NHWC", "HWIO", "NHWC"))
    enc = jnp.maximum(enc + p["b3"], 0.0)
    up = _bilinear_up2_align_corners(x)
    out = g[:, None, None, :] * enc + up
    return jnp.transpose(out, (0, 3, 1, 2))


if __name__ == "__main__":
    B, enc_c, out_c, H, W = 2, 16, 32, 8, 8
    key = jax.random.PRNGKey(0)
    kx, ksk, kp = jax.random.split(key, 3)
    x = jax.random.normal(kx, (B, out_c, H, W), jnp.float32)               # decoder feat (NCHW)
    skip = jax.random.normal(ksk, (B, enc_c, 2 * H, 2 * W), jnp.float32)   # encoder skip (NCHW)
    params = make_params(kp, enc_c, out_c)

    ref = reference(x, skip, params)

    # exact-math path (f32 MXU operands); tile_rows=8 exercises multi-tile + halos
    out_f32 = jax.block_until_ready(
        gau_forward(x, skip, params, mxu_dtype=jnp.float32, tile_rows=8))
    assert out_f32.shape == (B, out_c, 2 * H, 2 * W), out_f32.shape
    err = float(jnp.max(jnp.abs(out_f32 - ref)))
    assert err < 1e-3, f"f32 mismatch vs reference: {err}"

    # perf path (bf16 MXU operands, f32 accumulate/elementwise), auto tile size
    out_bf16 = jax.block_until_ready(
        gau_forward(x, skip, params, mxu_dtype=jnp.bfloat16))
    err_bf = float(jnp.max(jnp.abs(out_bf16 - ref)))
    assert err_bf < 2e-1, f"bf16 mismatch vs reference: {err_bf}"

    print("KERNEL_OK")
</pallas_src>

<mosaic_0001>
module attributes {stable_mosaic.version = 11 : i64} {
  func.func @_gate_kernel(%arg0: i32, %arg1: i32, %arg2: memref<1x64x32xf32, #tpu.memory_space<vmem>>, %arg3: memref<32x32xf32, #tpu.memory_space<vmem>>, %arg4: memref<1x32xf32, #tpu.memory_space<vmem>>, %arg5: memref<1x1x32xf32, #tpu.memory_space<vmem>>, %arg6: memref<1x32xf32, #tpu.memory_space<vmem>>) attributes {dimension_semantics = [#tpu.dimension_semantics<parallel>, #tpu.dimension_semantics<arbitrary>], iteration_bounds = array<i64: 2, 1>, scalar_prefetch = 0 : i64, scratch_operands = 1 : i64, tpu.core_type = #tpu.core_type<tc>, window_params = [{transform_indices = @transform_0, window_bounds = array<i64: 1, 64, 32>}, {pipeline_mode = #tpu.pipeline_mode<synchronous>, transform_indices = @transform_1, window_bounds = array<i64: 32, 32>}, {pipeline_mode = #tpu.pipeline_mode<synchronous>, transform_indices = @transform_2, window_bounds = array<i64: 1, 32>}, {transform_indices = @transform_3, window_bounds = array<i64: 1, 1, 32>}]} {
    %c0_i32 = arith.constant 0 : i32
    %0 = arith.cmpi eq, %arg1, %c0_i32 : i32
    %1 = arith.extui %0 : i1 to i32
    %c0_i32_0 = arith.constant 0 : i32
    %2 = arith.cmpi ne, %1, %c0_i32_0 : i32
    scf.if %2 {
      %cst_10 = arith.constant 0.000000e+00 : f32
      %13 = vector.broadcast %cst_10 : f32 to vector<1x32xf32>
      %c0_11 = arith.constant 0 : index
      %c0_12 = arith.constant 0 : index
      %14 = vector.load %arg6[%c0_11, %c0_12] : memref<1x32xf32, #tpu.memory_space<vmem>>, vector<1x32xf32>
      tpu.vector_store %arg6[%c0_11, %c0_12], %13 {strides = array<i32>} : memref<1x32xf32, #tpu.memory_space<vmem>>, vector<1x32xf32>,
    } else {
    }
    %cst = arith.constant 1.000000e+00 : f32
    %3 = vector.broadcast %cst : f32 to vector<1x64xf32>
    %c0 = arith.constant 0 : index
    %c0_1 = arith.constant 0 : index
    %4 = vector.load %arg6[%c0, %c0_1] : memref<1x32xf32, #tpu.memory_space<vmem>>, vector<1x32xf32>
    %c0_2 = arith.constant 0 : index
    %c0_3 = arith.constant 0 : index
    %c0_4 = arith.constant 0 : index
    %5 = vector.load %arg2[%c0_2, %c0_3, %c0_4] : memref<1x64x32xf32, #tpu.memory_space<vmem>>, vector<1x64x32xf32>
    %6 = vector.shape_cast %5 : vector<1x64x32xf32> to vector<64x32xf32>
    %cst_5 = arith.constant dense<0.000000e+00> : vector<1x32xf32>
    %7 = tpu.matmul %3, %6, %cst_5 {dimension_numbers = #tpu.dot_dimension_numbers<[1], [0], [0], [1], [0, 0, 1, 1], [], []>} : vector<1x64xf32>, vector<64x32xf32>, vector<1x32xf32> -> vector<1x32xf32>
    %8 = arith.addf %4, %7 : vector<1x32xf32>
    %c0_6 = arith.constant 0 : index
    %c0_7 = arith.constant 0 : index
    %9 = vector.load %arg6[%c0_6, %c0_7] : memref<1x32xf32, #tpu.memory_space<vmem>>, vector<1x32xf32>
    tpu.vector_store %arg6[%c0_6, %c0_7], %8 {strides = array<i32>} : memref<1x32xf32, #tpu.memory_space<vmem>>, vector<1x32xf32>,
    %c0_i32_8 = arith.constant 0 : i32
    %10 = arith.cmpi eq, %arg1, %c0_i32_8 : i32
    %11 = arith.extui %10 : i1 to i32
    %c0_i32_9 = arith.constant 0 : i32
    %12 = arith.cmpi ne, %11, %c0_i32_9 : i32
    scf.if %12 {
      %c0_10 = arith.constant 0 : index
      %c0_11 = arith.constant 0 : index
      %13 = vector.load %arg6[%c0_10, %c0_11] : memref<1x32xf32, #tpu.memory_space<vmem>>, vector<1x32xf32>
      %c0_12 = arith.constant 0 : index
      %c0_13 = arith.constant 0 : index
      %14 = vector.load %arg3[%c0_12, %c0_13] : memref<32x32xf32, #tpu.memory_space<vmem>>, vector<32x32xf32>
      %cst_14 = arith.constant dense<0.000000e+00> : vector<1x32xf32>
      %15 = tpu.matmul %13, %14, %cst_14 {dimension_numbers = #tpu.dot_dimension_numbers<[1], [0], [0], [1], [0, 0, 1, 1], [], []>} : vector<1x32xf32>, vector<32x32xf32>, vector<1x32xf32> -> vector<1x32xf32>
      %c0_15 = arith.constant 0 : index
      %c0_16 = arith.constant 0 : index
      %16 = vector.load %arg4[%c0_15, %c0_16] : memref<1x32xf32, #tpu.memory_space<vmem>>, vector<1x32xf32>
      %17 = arith.addf %15, %16 : vector<1x32xf32>
      %18 = arith.negf %17 : vector<1x32xf32>
      %19 = math.exp %18 : vector<1x32xf32>
      %cst_17 = arith.constant 1.000000e+00 : f32
      %20 = vector.broadcast %cst_17 : f32 to vector<1x32xf32>
      %21 = arith.addf %20, %19 : vector<1x32xf32>
      %22 = arith.divf %20, %21 : vector<1x32xf32>
      %c0_18 = arith.constant 0 : index
      %c0_19 = arith.constant 0 : index
      %c0_20 = arith.constant 0 : index
      %23 = vector.load %arg5[%c0_18, %c0_19, %c0_20] : memref<1x1x32xf32, #tpu.memory_space<vmem>>, vector<1x1x32xf32>
      %24 = vector.shape_cast %23 : vector<1x1x32xf32> to vector<1x32xf32>
      %25 = vector.shape_cast %22 : vector<1x32xf32> to vector<1x1x32xf32>
      tpu.vector_store %arg5[%c0_18, %c0_19, %c0_20], %25 {strides = array<i32>} : memref<1x1x32xf32, #tpu.memory_space<vmem>>, vector<1x1x32xf32>,
    } else {
    }
    return
  }
  func.func @transform_0(%arg0: i32, %arg1: i32) -> (i32, i32, i32) {
    %c0_i32 = arith.constant 0 : i32
    %c0_i32_0 = arith.constant 0 : i32
    return %arg0, %arg1, %c0_i32 : i32, i32, i32
  }
  func.func @transform_1(%arg0: i32, %arg1: i32) -> (i32, i32) {
    %c0_i32 = arith.constant 0 : i32
    %c0_i32_0 = arith.constant 0 : i32
    %c0_i32_1 = arith.constant 0 : i32
    return %c0_i32, %c0_i32_0 : i32, i32
  }
  func.func @transform_2(%arg0: i32, %arg1: i32) -> (i32, i32) {
    %c0_i32 = arith.constant 0 : i32
    %c0_i32_0 = arith.constant 0 : i32
    %c0_i32_1 = arith.constant 0 : i32
    return %c0_i32, %c0_i32_0 : i32, i32
  }
  func.func @transform_3(%arg0: i32, %arg1: i32) -> (i32, i32, i32) {
    %c0_i32 = arith.constant 0 : i32
    %c0_i32_0 = arith.constant 0 : i32
    %c0_i32_1 = arith.constant 0 : i32
    return %arg0, %c0_i32, %c0_i32_0 : i32, i32, i32
  }
}

</mosaic_0001>

<bundles_post_ra>
// kernel: tpu_custom_call.1
= control target key start
LH: loop header
LB: loop body
LE: loop exit
PB: predicated region body
PF: predicated region fallthrough
CT: control target
= control target key end

     0   :  { %8 = vsyncpa [#allocation4], 0  ;;  %s664_s0 = inlined_call_operand.vmem [shape: f32[2,64,32], index: 0, kind: input, shape index: {}]   ;;  %s665_s1 = inlined_call_operand.vmem [shape: f32[32,32], index: 1, kind: input, shape index: {}]   ;;  %s666_s2 = inlined_call_operand.vmem [shape: f32[1,32], index: 2, kind: input, shape index: {}]   ;;  %s667_s3 = inlined_call_operand.hbm [shape: f32[2,1,32], index: 3, kind: output, shape index: {}]  }
   0x1   :  { %10 = vsyncpa [#allocation4 + $0x1], 0  ;;  %s549_s12 = smov 0   ;;  %s551_s13 = smov 0  }
   0x2   :  { %s553_s14 = smov 0   ;;  %s555_s15 = smov 0  }
   0x3   :  { %s557_s16 = smov 0   ;;  %s559_s17 = smov 0  }
   0x4 LB: > { %s373_s18 = sadd.s32 4294967295, %s525_s17   ;;  %s374_s19 = sadd.s32 4294967294, %s525_s17   ;;  %s525_s17 = sphi %s559_s17, %s16_s17   ;;  %s521_s16 = sphi %s557_s16, %s674_s16   ;;  %s517_s15 = sphi %s555_s15, %s673_s15   ;;  %s513_s14 = sphi %s553_s14, %s672_s14   ;;  %s509_s13 = sphi %s551_s13, %s671_s13   ;;  %s505_s12 = sphi %s549_s12, %s670_s12  }
   0x5   : > { %s28_s20 = sadd.s32 1, %s521_s16  ;;  %s105_s21 = sadd.s32 1, %s513_s14 }
   0x6   : > { %p30_p0 = scmp.ge.s32.totalorder %s28_s20, 2  ;;  %p115_p1 = scmp.ne.s32.totalorder %s513_s14, %s509_s13 }
   0x7   : > { %p116_p2 = scmp.eq.s32.totalorder %s373_s18, 1  ;;  %p121_p3 = scmp.ne.s32.totalorder %s509_s13, %s505_s12 }
   0x8   : > { %s676_s20 = smov (%p30_p0, %s28_s20), 0  ;;  %p122_p5 = scmp.eq.s32.totalorder %s374_s19, 1 }
   0x9   : > { %p589_p4 = por %p116_p2, %p115_p1  ;;  %s102_s23 = ssub.s32 %s521_s16, %s676_s20 }
   0xa   : > { %p377_p6 = scmp.ge.s32.totalorder %s525_s17, 1  ;;  %p103_p7 = scmp.eq.s32.totalorder %s102_s23, 0 }
   0xb   : > { %p596_p8 = por %p122_p5, %p121_p3  ;;  %p159_p9 = scmp.lt.s32.totalorder %s525_s17, 3 }
   0xc   : > { %s602_s25 = scalar_select %p103_p7, %s513_s14, %s105_s21  }
   0xd   : > { %p160_p10 = pnand %p377_p6, %p159_p9 }
   0xe   : > { %p187_p11 = scmp.lt.s32.totalorder (!%p160_p10), %s517_s15, 1  ;;  %s184_s21 = sand.u32 (!%p160_p10), 1, %s509_s13  }
   0xf   : > { %163 = sbr.rel (%p160_p10) target bundleno = 335 (0x14f), region = 32  ;;  %s185_s28 = scalar_lea.vmem (!%p160_p10), [#allocation3], %s184_s21 }
  0x10   : > { %s302_s29 = sshll.u32 (!%p160_p10), %s185_s28, 4  ;;  %s467_s8 = scalar_lea.hbm (!%p160_p10), %s667_s3, 2  ;;  %s303_s29 = int_to_ptr.vmem [resolvable:$true] %s302_s29 }
  0x14   : > { %vm200_vm0 = vcmask 253952   ;;  %v527_v0 = vmov 0.0   ;;  %s188_s26 = scalar_select %p187_p11, %s517_s15, 1  ;;  %vm211_vm1 = vcmask 523264   ;;  %v528_v9 = vmov 1.0   ;;  %v245_v10 = vld [vmem:[%s665_s1 + $0x18] sm:$0xff] }
  0x15   : > { %201 = vst.msk [vmem:[#allocation2] sm:$0x1] %vm200_vm0, %v527_v0  ;;  %v244_v11 = vld [vmem:[%s665_s1 + $0x10] sm:$0xff]  ;;  %263 = vmatpush.msra.mxu1 %v245_v10  ;;  %v243_v12 = vld [vmem:[%s665_s1 + $0x8] sm:$0xff]  ;;  %v242_v13 = vld [vmem:[%s665_s1] sm:$0xff]  ;;  %vm247_vm2 = vcmask 261120  }
  0x16   : > { %s385_s27 = sshll.u32 %s188_s26, 6  ;;  %v246_v18 = vld [vmem:[%s666_s2] sm:$0x1] }
  0x17   : > { %s194_s30 = scalar_lea.vmem %s664_s0, %s385_s27  ;;  %264 = vmatpush.msra.mxu1 %v244_v11  ;;  %s300_s27 = scalar_lea.hbm %s667_s3, %s517_s15 }
  0x18   : > { %v210_v1 = vld [vmem:[%s194_s30 + $0x38] sm:$0xff]  ;;  %v209_v2 = vld [vmem:[%s194_s30 + $0x30] sm:$0xff]  ;;  %v208_v3 = vld [vmem:[%s194_s30 + $0x28] sm:$0xff]  ;;  %s292_s15 = scalar_lea.sflag [#allocation4], %s184_s21 }
  0x19   : > { %223 = vmatpush.msra.mxu0 %v210_v1  ;;  %v207_v4 = vld [vmem:[%s194_s30 + $0x20] sm:$0xff]  ;;  %v206_v5 = vld [vmem:[%s194_s30 + $0x18] sm:$0xff]  ;;  %v205_v6 = vld [vmem:[%s194_s30 + $0x10] sm:$0xff]  ;;  %265 = vmatpush.msra.mxu1 %v243_v12 }
  0x1a   : > { %v204_v7 = vld [vmem:[%s194_s30 + $0x8] sm:$0xff]  ;;  %v203_v8 = vld [vmem:[%s194_s30] sm:$0xff]  ;;  %s304_s30 = sshll.u32 %s300_s27, 4  ;;  %s305_s30 = int_to_ptr.hbm [resolvable:$true] %s304_s30 }
  0x1b   : > { %224 = vmatpush.msra.mxu0 %v209_v2  ;;  %266 = vmatpush.msra.mxu1 %v242_v13  ;;  %s461_s4 = sshra.s32 %s305_s30, 4  ;;  %s462_s4 = int_to_ptr.hbm [resolvable:$true] %s461_s4 }
  0x1c   : > { %v202_v14 = vld [vmem:[#allocation2] sm:$0x1]  ;;  %s463_s5 = scalar_lea.hbm %s462_s4, 1  ;;  %p468_p1 = scmp.lt.s32.totalorder %s462_s4, %s667_s3 }
  0x1d   : > { %225 = vmatpush.msra.mxu0 %v208_v3  ;;  %p464_p12 = scmp.ne.s32.totalorder %s462_s4, %s463_s5  ;;  %p469_p2 = scmp.lt.s32.totalorder %s467_s8, %s463_s5 }
  0x1f   : > { %226 = vmatpush.msra.mxu0 %v207_v4  ;;  %p465_p13 = pnand %p464_p12, %p589_p4  ;;  %p470_p3 = por %p469_p2, %p468_p1 }
  0x21   : > { %227 = vmatpush.msra.mxu0 %v206_v5  ;;  %p466_p0 = pneg %p465_p13 }
  0x23   : > { %228 = vmatpush.msra.mxu0 %v205_v6  ;;  %p471_p5 = pnand %p470_p3, %p466_p0 }
  0x25   : > { %229 = vmatpush.msra.mxu0 %v204_v7 }
  0x27   : > { %230 = vmatpush.msra.mxu0 %v203_v8 }
  0x28   : > { %380 = vmatmul.msk.f32.vlgmr.msra.gmra.mxu0 %vm211_vm1, %v528_v9 }
  0xa5   : > { %v232_v15 = vpop.f32.mrf.mxu0 }
  0xa6   : > { %v235_v16 = vadd.f32 %v232_v15, %v202_v14 }
  0xa8   : > { %237 = vst.msk [vmem:[#allocation2] sm:$0x1] %vm200_vm0, %v235_v16 }
  0xaf   : > { %v241_v17 = vld [vmem:[#allocation2] sm:$0x1] }
  0xb0   : > { %381 = vmatmul.msk.f32.vlgmr.msra.gmra.mxu1 %vm247_vm2, %v241_v17 }
 0x12d   : > { %v268_v19 = vpop.f32.mrf.mxu1 }
 0x12e   : > { %v269_v20 = vadd.f32 %v268_v19, %v246_v18 }
 0x130   : > { %v382_v21 = vmul.f32 -1.442695, %v269_v20 }
 0x132   : > { %443 = vpow2.f32 %v382_v21 }
 0x138   : > { %v444_v22 = vpop.eup %443 }
 0x139   : > { %v274_v23 = vadd.f32 1.0, %v444_v22 }
 0x13b   : > { %445 = vrcp.f32 %v274_v23  ;;  %v286_v27 = vand.u32 2147483648, %v274_v23  ;;  %v284_v29 = vand.u32 2147483647, %v274_v23  ;;  %vm280_vm4 = vweird.f32 %v274_v23 }
 0x13d   : > { %v287_v31 = vor.u32 1.1754944e-38, %v286_v27  ;;  %vm285_vm6 = vcmp.eq.f32.partialorder %v284_v29, 8.507059e+37 }
 0x141   : > { %v446_v24 = vpop.eup %445 }
 0x142   : > { %v276_v25 = vmul.f32 %v446_v24, %v274_v23  ;;  %vm281_vm3 = vweird.f32 %v446_v24 }
 0x143   : > { %vm282_vm5 = vmor %vm280_vm4, %vm281_vm3 }
 0x144   : > { %v277_v26 = vsub.f32 1.0, %v276_v25 }
 0x146   : > { %v278_v28 = vmul.f32 %v446_v24, %v277_v26 }
 0x148   : > { %v279_v30 = vadd.f32 %v446_v24, %v278_v28 }
 0x14a   : > { %v283_v32 = vsel %vm282_vm5, %v446_v24, %v279_v30 }
 0x14b   : > { %v288_v33 = vsel %vm285_vm6, %v287_v31, %v283_v32 }
 0x14c   : > { %290 = vst.msk [vmem:[%s185_s28] sm:$0x1] %vm200_vm0, %v288_v33 }
 0x14d   : > { %474 = shalt.err (!%p471_p5)
}
 0x14e   : > { %386 = dma.vmem_to_hbm [thread:$0]  (%p589_p4), %s303_s29, 16, %s305_s30, %s292_s15  }
 0x14f PF: > { %p392_p6 = scmp.ge.s32.totalorder %s525_s17, 2  ;;  %s316_s11 = sand.u32 1, %s505_s12  }
 0x150   : > { %s317_s18 = scalar_lea.sflag [#allocation4], %s316_s11 }
 0x151   : > { %p389_p7 = pnand %p392_p6, %p596_p8 }
 0x153   : > { %p390_p9 = pneg %p389_p7 }
 0x155   : > { %500 = dma.done.wait (%p390_p9), %s317_s18, 16  }
 0x156   : > { %502 = vsyncadd (%p390_p9), %s317_s18, 4294967280  ;;  %s16_s17 = sadd.s32 1, %s525_s17   ;;  %s670_s12 = smov %s509_s13 }
 0x157   : > { %p13_p10 = scmp.ge.s32.totalorder %s16_s17, 4   ;;  %s671_s13 = smov %s513_s14 }
 0x158   : > { %s672_s14 = smov %s602_s25  ;;  %s673_s15 = smov %s521_s16 }
 0x159   : > { %s674_s16 = smov %s676_s20  ;;  %15 = sbr.rel (!%p13_p10) target bundleno = 4 (0x4), region = 75 }
 0x15e   :  { %322 = vsyncpa [#allocation4], 1 }
 0x15f   :  { %324 = vsyncpa [#allocation4 + $0x1], 1 }

</bundles_post_ra>
